<compile_context>
chip_gen: v6e
topology: v6e:2x2x1
jax: 0.10.0
libtpu: 0.0.40
codegen_flags: <defaults>
</compile_context>

<pallas_src>
import jax
import jax.numpy as jnp
from jax.experimental import pallas as pl
from jax.experimental.pallas import tpu as pltpu


def wireframe_gnn_kernel(edge_ref, x_ref,
                         w1_ref, b1_ref, g1_ref, be1_ref,
                         w2_ref, b2_ref, g2_ref, be2_ref,
                         wfc_ref, bf_ref,
                         o_ref):
    eps = 1e-5
    n = x_ref.shape[1]
    e = edge_ref.shape[2]

    x = x_ref[0]                         # [N, F]  f32
    edges = edge_ref[0]                  # [2, E]  int32
    src = edges[0:1, :]                  # [1, E]
    dst = edges[1:2, :]                  # [1, E]

    # ---- build (A + I) edge counts on the MXU from one-hot rows (no host scatter) ----
    node_iota = jax.lax.broadcasted_iota(jnp.int32, (n, e), 0)
    src_oh = (node_iota == src).astype(jnp.float32)           # [N, E]
    dst_oh = (node_iota == dst).astype(jnp.float32)           # [N, E]
    eye = (jax.lax.broadcasted_iota(jnp.int32, (n, n), 0) ==
           jax.lax.broadcasted_iota(jnp.int32, (n, n), 1)).astype(jnp.float32)
    # a_counts[d, s] = multiplicity of directed edge s -> d, plus self loops.
    a_counts = jax.lax.dot_general(dst_oh, src_oh, (((1,), (1,)), ((), ())),
                                   preferred_element_type=jnp.float32) + eye

    deg = jnp.sum(a_counts, axis=1, keepdims=True)             # [N, 1], >= 1 (self loops)
    dis = jax.lax.rsqrt(deg)                                    # D^-1/2 as a column
    a_bf = a_counts.astype(jnp.bfloat16)

    def aggregate(z):
        # D^-1/2 (A + I) D^-1/2 @ z == dis * ((A + I) @ (dis * z)):
        # both D^-1/2 factors are per-node row scalings, so no transpose of dis.
        zs = (dis * z).astype(jnp.bfloat16)
        return dis * jnp.dot(a_bf, zs, preferred_element_type=jnp.float32)

    def bn_relu(h, g_ref, be_ref):
        # Training-mode BatchNorm (batch statistics) folded into one scale/shift.
        inv_n = 1.0 / n
        mu = jnp.sum(h, axis=0, keepdims=True) * inv_n
        ex2 = jnp.sum(h * h, axis=0, keepdims=True) * inv_n
        var = ex2 - mu * mu
        scale = g_ref[...] * jax.lax.rsqrt(var + eps)
        shift = be_ref[...] - scale * mu
        return jnp.maximum(h * scale + shift, 0.0)

    # ---- GNN layer 1: GCNConv -> BN -> ReLU ----
    xw = jnp.dot(x.astype(jnp.bfloat16), w1_ref[...],
                 preferred_element_type=jnp.float32)
    h1 = bn_relu(aggregate(xw) + b1_ref[...], g1_ref, be1_ref)

    # ---- GNN layer 2 ----
    hw = jnp.dot(h1.astype(jnp.bfloat16), w2_ref[...],
                 preferred_element_type=jnp.float32)
    h2 = bn_relu(aggregate(hw) + b2_ref[...], g2_ref, be2_ref)

    # ---- fused fc on concat([x, h1, h2], dim=1) + ReLU (single MXU push) ----
    feat = jnp.concatenate([x, h1, h2], axis=1).astype(jnp.bfloat16)
    out = jnp.dot(feat, wfc_ref[...], preferred_element_type=jnp.float32) + bf_ref[...]
    o_ref[0] = jnp.maximum(out, 0.0)


def wireframe_gnn(node_features, edge_idx, params):
    """node_features: [B, N, F] float32, edge_idx: [B, 2, E] int32 (src row 0, dst row 1)."""
    b, n, f = node_features.shape

    # matmul-side params in bf16 (f32 accumulation inside the kernel); BN/bias stay f32.
    w1 = params["w1"].astype(jnp.bfloat16)
    w2 = params["w2"].astype(jnp.bfloat16)
    wfc = params["wfc"].astype(jnp.bfloat16)

    operands = (edge_idx, node_features,
                w1, params["b1"], params["g1"], params["be1"],
                w2, params["b2"], params["g2"], params["be2"],
                wfc, params["bf"])

    def per_graph(shape):
        zeros = (0,) * (len(shape) - 1)
        return pl.BlockSpec((1,) + tuple(shape[1:]), lambda i, z=zeros: (i,) + z)

    def shared(arr):
        zeros = (0,) * arr.ndim
        return pl.BlockSpec(tuple(arr.shape), lambda i, z=zeros: z)

    in_specs = [
        per_graph(edge_idx.shape),
        per_graph(node_features.shape),
        shared(w1), shared(params["b1"]), shared(params["g1"]), shared(params["be1"]),
        shared(w2), shared(params["b2"]), shared(params["g2"]), shared(params["be2"]),
        shared(wfc), shared(params["bf"]),
    ]

    # TODO(synk): for N beyond a few hundred nodes, tile the aggregation over a
    # k-reduction grid axis with a VMEM accumulator instead of an all-resident (A+I).
    return pl.pallas_call(
        wireframe_gnn_kernel,
        out_shape=jax.ShapeDtypeStruct((b, n, f), jnp.float32),
        grid=(b,),
        in_specs=in_specs,
        out_specs=pl.BlockSpec((1, n, f), lambda i: (i, 0, 0)),
        compiler_params=pltpu.CompilerParams(dimension_semantics=("parallel",)),
    )(*operands)


def init_params(key, line_feature_len):
    f = line_feature_len
    f1, f2 = f // 2, f // 4            # two GNN layers, each halving the dim
    cat_ch = f + f1 + f2               # concat([x, h1, h2]) channel count
    ks = jax.random.split(key, 4)

    def glorot(k, shape):
        lim = (6.0 / (shape[0] + shape[1])) ** 0.5
        return jax.random.uniform(k, shape, jnp.float32, -lim, lim)

    wfc_torch = glorot(ks[2], (f, cat_ch))   # PyTorch Linear weight layout [out, in]
    return {
        "w1": glorot(ks[0], (f, f1)),
        "b1": jnp.zeros((1, f1), jnp.float32),
        "g1": jnp.ones((1, f1), jnp.float32),
        "be1": jnp.zeros((1, f1), jnp.float32),
        "w2": glorot(ks[1], (f1, f2)),
        "b2": jnp.zeros((1, f2), jnp.float32),
        "g2": jnp.ones((1, f2), jnp.float32),
        "be2": jnp.zeros((1, f2), jnp.float32),
        # fused fc weight, pre-transposed so the kernel does concat([x,h1,h2]) @ wfc
        "wfc": jnp.transpose(wfc_torch),      # [cat_ch, f]
        "bf": jax.random.uniform(ks[3], (1, f), jnp.float32, -0.1, 0.1),
    }


if __name__ == "__main__":
    # TODO(synk): BatchNorm uses per-call batch statistics (training mode); running
    # mean/var (eval mode) is not modeled, matching the previous implementation.
    key = jax.random.PRNGKey(0)
    k_feat, k_edge, k_param = jax.random.split(key, 3)

    B = 4                   # batch of graphs (grid axis; splits across v7x's 2 TCs)
    N = 16                  # nodes (wireframe lines) per graph
    F = 32                  # line_feature_len
    E = 40                  # directed edges per graph

    node_features = jax.random.normal(k_feat, (B, N, F), jnp.float32)
    edge_idx = jax.random.randint(k_edge, (B, 2, E), 0, N, jnp.int32)
    params = init_params(k_param, F)

    fwd = jax.jit(wireframe_gnn)
    out = fwd(node_features, edge_idx, params)
    jax.block_until_ready(out)
    assert out.shape == (B, N, F)
    print("KERNEL_OK")
</pallas_src>

<mosaic_0001>
module attributes {stable_mosaic.version = 11 : i64} {
  func.func @wireframe_gnn_kernel(%arg0: i32, %arg1: memref<1x2x40xi32, #tpu.memory_space<vmem>>, %arg2: memref<1x16x32xf32, #tpu.memory_space<vmem>>, %arg3: memref<32x16xbf16, #tpu.memory_space<vmem>>, %arg4: memref<1x16xf32, #tpu.memory_space<vmem>>, %arg5: memref<1x16xf32, #tpu.memory_space<vmem>>, %arg6: memref<1x16xf32, #tpu.memory_space<vmem>>, %arg7: memref<16x8xbf16, #tpu.memory_space<vmem>>, %arg8: memref<1x8xf32, #tpu.memory_space<vmem>>, %arg9: memref<1x8xf32, #tpu.memory_space<vmem>>, %arg10: memref<1x8xf32, #tpu.memory_space<vmem>>, %arg11: memref<56x32xbf16, #tpu.memory_space<vmem>>, %arg12: memref<1x32xf32, #tpu.memory_space<vmem>>, %arg13: memref<1x16x32xf32, #tpu.memory_space<vmem>>) attributes {dimension_semantics = [#tpu.dimension_semantics<parallel>], iteration_bounds = array<i64: 4>, scalar_prefetch = 0 : i64, scratch_operands = 0 : i64, tpu.core_type = #tpu.core_type<tc>, window_params = [{transform_indices = @transform_0, window_bounds = array<i64: 1, 2, 40>}, {transform_indices = @transform_1, window_bounds = array<i64: 1, 16, 32>}, {pipeline_mode = #tpu.pipeline_mode<synchronous>, transform_indices = @transform_2, window_bounds = array<i64: 32, 16>}, {pipeline_mode = #tpu.pipeline_mode<synchronous>, transform_indices = @transform_3, window_bounds = array<i64: 1, 16>}, {pipeline_mode = #tpu.pipeline_mode<synchronous>, transform_indices = @transform_4, window_bounds = array<i64: 1, 16>}, {pipeline_mode = #tpu.pipeline_mode<synchronous>, transform_indices = @transform_5, window_bounds = array<i64: 1, 16>}, {pipeline_mode = #tpu.pipeline_mode<synchronous>, transform_indices = @transform_6, window_bounds = array<i64: 16, 8>}, {pipeline_mode = #tpu.pipeline_mode<synchronous>, transform_indices = @transform_7, window_bounds = array<i64: 1, 8>}, {pipeline_mode = #tpu.pipeline_mode<synchronous>, transform_indices = @transform_8, window_bounds = array<i64: 1, 8>}, {pipeline_mode = #tpu.pipeline_mode<synchronous>, transform_indices = @transform_9, window_bounds = array<i64: 1, 8>}, {pipeline_mode = #tpu.pipeline_mode<synchronous>, transform_indices = @transform_10, window_bounds = array<i64: 56, 32>}, {pipeline_mode = #tpu.pipeline_mode<synchronous>, transform_indices = @transform_11, window_bounds = array<i64: 1, 32>}, {transform_indices = @transform_12, window_bounds = array<i64: 1, 16, 32>}]} {
    %c0 = arith.constant 0 : index
    %c0_0 = arith.constant 0 : index
    %c0_1 = arith.constant 0 : index
    %0 = vector.load %arg2[%c0, %c0_0, %c0_1] : memref<1x16x32xf32, #tpu.memory_space<vmem>>, vector<1x16x32xf32>
    %1 = vector.shape_cast %0 : vector<1x16x32xf32> to vector<16x32xf32>
    %c0_2 = arith.constant 0 : index
    %c0_3 = arith.constant 0 : index
    %c0_4 = arith.constant 0 : index
    %2 = vector.load %arg1[%c0_2, %c0_3, %c0_4] : memref<1x2x40xi32, #tpu.memory_space<vmem>>, vector<1x2x40xi32>
    %3 = vector.shape_cast %2 : vector<1x2x40xi32> to vector<2x40xi32>
    %4 = vector.extract_strided_slice %3 {offsets = [0, 0], sizes = [1, 40], strides = [1, 1]} : vector<2x40xi32> to vector<1x40xi32>
    %5 = vector.extract_strided_slice %3 {offsets = [1, 0], sizes = [1, 40], strides = [1, 1]} : vector<2x40xi32> to vector<1x40xi32>
    %6 = tpu.iota {dimensions = array<i32: 0>} : vector<16x40xi32>
    %7 = vector.broadcast %4 : vector<1x40xi32> to vector<16x40xi32>
    %8 = arith.cmpi eq, %6, %7 : vector<16x40xi32>
    %9 = arith.extui %8 : vector<16x40xi1> to vector<16x40xi32>
    %10 = arith.sitofp %9 : vector<16x40xi32> to vector<16x40xf32>
    %11 = vector.broadcast %5 : vector<1x40xi32> to vector<16x40xi32>
    %12 = arith.cmpi eq, %6, %11 : vector<16x40xi32>
    %13 = arith.extui %12 : vector<16x40xi1> to vector<16x40xi32>
    %14 = arith.sitofp %13 : vector<16x40xi32> to vector<16x40xf32>
    %15 = tpu.iota {dimensions = array<i32: 0>} : vector<16x16xi32>
    %16 = tpu.iota {dimensions = array<i32: 1>} : vector<16x16xi32>
    %17 = arith.cmpi eq, %15, %16 : vector<16x16xi32>
    %18 = arith.extui %17 : vector<16x16xi1> to vector<16x16xi32>
    %19 = arith.sitofp %18 : vector<16x16xi32> to vector<16x16xf32>
    %cst = arith.constant dense<0.000000e+00> : vector<16x16xf32>
    %20 = tpu.matmul %14, %10, %cst {dimension_numbers = #tpu.dot_dimension_numbers<[1], [1], [0], [0], [0, 0, 1, 0], [], []>} : vector<16x40xf32>, vector<16x40xf32>, vector<16x16xf32> -> vector<16x16xf32>
    %21 = arith.addf %20, %19 : vector<16x16xf32>
    %cst_5 = arith.constant dense<0.000000e+00> : vector<16xf32>
    %22 = vector.multi_reduction <add>, %21, %cst_5 [1] : vector<16x16xf32> to vector<16xf32>
    %23 = vector.shape_cast %22 : vector<16xf32> to vector<16x1xf32>
    %24 = math.rsqrt %23 : vector<16x1xf32>
    %25 = arith.truncf %21 : vector<16x16xf32> to vector<16x16xbf16>
    %26 = arith.truncf %1 : vector<16x32xf32> to vector<16x32xbf16>
    %c0_6 = arith.constant 0 : index
    %c0_7 = arith.constant 0 : index
    %27 = vector.load %arg3[%c0_6, %c0_7] : memref<32x16xbf16, #tpu.memory_space<vmem>>, vector<32x16xbf16>
    %cst_8 = arith.constant dense<0.000000e+00> : vector<16x16xf32>
    %28 = tpu.matmul %26, %27, %cst_8 {dimension_numbers = #tpu.dot_dimension_numbers<[1], [0], [0], [1], [0, 0, 1, 1], [], []>} : vector<16x32xbf16>, vector<32x16xbf16>, vector<16x16xf32> -> vector<16x16xf32>
    %29 = vector.broadcast %24 : vector<16x1xf32> to vector<16x16xf32>
    %30 = arith.mulf %29, %28 : vector<16x16xf32>
    %31 = arith.truncf %30 : vector<16x16xf32> to vector<16x16xbf16>
    %cst_9 = arith.constant dense<0.000000e+00> : vector<16x16xf32>
    %32 = tpu.matmul %25, %31, %cst_9 {dimension_numbers = #tpu.dot_dimension_numbers<[1], [0], [0], [1], [0, 0, 1, 1], [], []>} : vector<16x16xbf16>, vector<16x16xbf16>, vector<16x16xf32> -> vector<16x16xf32>
    %33 = vector.broadcast %24 : vector<16x1xf32> to vector<16x16xf32>
    %34 = arith.mulf %33, %32 : vector<16x16xf32>
    %c0_10 = arith.constant 0 : index
    %c0_11 = arith.constant 0 : index
    %35 = vector.load %arg4[%c0_10, %c0_11] : memref<1x16xf32, #tpu.memory_space<vmem>>, vector<1x16xf32>
    %36 = vector.broadcast %35 : vector<1x16xf32> to vector<16x16xf32>
    %37 = arith.addf %34, %36 : vector<16x16xf32>
    %cst_12 = arith.constant dense<0.000000e+00> : vector<16xf32>
    %38 = vector.multi_reduction <add>, %37, %cst_12 [0] : vector<16x16xf32> to vector<16xf32>
    %39 = vector.shape_cast %38 : vector<16xf32> to vector<1x16xf32>
    %cst_13 = arith.constant 6.250000e-02 : f32
    %40 = vector.broadcast %cst_13 : f32 to vector<1x16xf32>
    %41 = arith.mulf %39, %40 : vector<1x16xf32>
    %42 = arith.mulf %37, %37 : vector<16x16xf32>
    %cst_14 = arith.constant dense<0.000000e+00> : vector<16xf32>
    %43 = vector.multi_reduction <add>, %42, %cst_14 [0] : vector<16x16xf32> to vector<16xf32>
    %44 = vector.shape_cast %43 : vector<16xf32> to vector<1x16xf32>
    %cst_15 = arith.constant 6.250000e-02 : f32
    %45 = vector.broadcast %cst_15 : f32 to vector<1x16xf32>
    %46 = arith.mulf %44, %45 : vector<1x16xf32>
    %47 = arith.mulf %41, %41 : vector<1x16xf32>
    %48 = arith.subf %46, %47 : vector<1x16xf32>
    %c0_16 = arith.constant 0 : index
    %c0_17 = arith.constant 0 : index
    %49 = vector.load %arg5[%c0_16, %c0_17] : memref<1x16xf32, #tpu.memory_space<vmem>>, vector<1x16xf32>
    %cst_18 = arith.constant 9.99999974E-6 : f32
    %50 = vector.broadcast %cst_18 : f32 to vector<1x16xf32>
    %51 = arith.addf %48, %50 : vector<1x16xf32>
    %52 = math.rsqrt %51 : vector<1x16xf32>
    %53 = arith.mulf %49, %52 : vector<1x16xf32>
    %c0_19 = arith.constant 0 : index
    %c0_20 = arith.constant 0 : index
    %54 = vector.load %arg6[%c0_19, %c0_20] : memref<1x16xf32, #tpu.memory_space<vmem>>, vector<1x16xf32>
    %55 = arith.mulf %53, %41 : vector<1x16xf32>
    %56 = arith.subf %54, %55 : vector<1x16xf32>
    %57 = vector.broadcast %53 : vector<1x16xf32> to vector<16x16xf32>
    %58 = arith.mulf %37, %57 : vector<16x16xf32>
    %59 = vector.broadcast %56 : vector<1x16xf32> to vector<16x16xf32>
    %60 = arith.addf %58, %59 : vector<16x16xf32>
    %cst_21 = arith.constant 0.000000e+00 : f32
    %61 = vector.broadcast %cst_21 : f32 to vector<16x16xf32>
    %62 = arith.maximumf %60, %61 : vector<16x16xf32>
    %63 = arith.truncf %62 : vector<16x16xf32> to vector<16x16xbf16>
    %c0_22 = arith.constant 0 : index
    %c0_23 = arith.constant 0 : index
    %64 = vector.load %arg7[%c0_22, %c0_23] : memref<16x8xbf16, #tpu.memory_space<vmem>>, vector<16x8xbf16>
    %cst_24 = arith.constant dense<0.000000e+00> : vector<16x8xf32>
    %65 = tpu.matmul %63, %64, %cst_24 {dimension_numbers = #tpu.dot_dimension_numbers<[1], [0], [0], [1], [0, 0, 1, 1], [], []>} : vector<16x16xbf16>, vector<16x8xbf16>, vector<16x8xf32> -> vector<16x8xf32>
    %66 = vector.broadcast %24 : vector<16x1xf32> to vector<16x8xf32>
    %67 = arith.mulf %66, %65 : vector<16x8xf32>
    %68 = arith.truncf %67 : vector<16x8xf32> to vector<16x8xbf16>
    %cst_25 = arith.constant dense<0.000000e+00> : vector<16x8xf32>
    %69 = tpu.matmul %25, %68, %cst_25 {dimension_numbers = #tpu.dot_dimension_numbers<[1], [0], [0], [1], [0, 0, 1, 1], [], []>} : vector<16x16xbf16>, vector<16x8xbf16>, vector<16x8xf32> -> vector<16x8xf32>
    %70 = vector.broadcast %24 : vector<16x1xf32> to vector<16x8xf32>
    %71 = arith.mulf %70, %69 : vector<16x8xf32>
    %c0_26 = arith.constant 0 : index
    %c0_27 = arith.constant 0 : index
    %72 = vector.load %arg8[%c0_26, %c0_27] : memref<1x8xf32, #tpu.memory_space<vmem>>, vector<1x8xf32>
    %73 = vector.broadcast %72 : vector<1x8xf32> to vector<16x8xf32>
    %74 = arith.addf %71, %73 : vector<16x8xf32>
    %cst_28 = arith.constant dense<0.000000e+00> : vector<8xf32>
    %75 = vector.multi_reduction <add>, %74, %cst_28 [0] : vector<16x8xf32> to vector<8xf32>
    %76 = vector.shape_cast %75 : vector<8xf32> to vector<1x8xf32>
    %cst_29 = arith.constant 6.250000e-02 : f32
    %77 = vector.broadcast %cst_29 : f32 to vector<1x8xf32>
    %78 = arith.mulf %76, %77 : vector<1x8xf32>
    %79 = arith.mulf %74, %74 : vector<16x8xf32>
    %cst_30 = arith.constant dense<0.000000e+00> : vector<8xf32>
    %80 = vector.multi_reduction <add>, %79, %cst_30 [0] : vector<16x8xf32> to vector<8xf32>
    %81 = vector.shape_cast %80 : vector<8xf32> to vector<1x8xf32>
    %cst_31 = arith.constant 6.250000e-02 : f32
    %82 = vector.broadcast %cst_31 : f32 to vector<1x8xf32>
    %83 = arith.mulf %81, %82 : vector<1x8xf32>
    %84 = arith.mulf %78, %78 : vector<1x8xf32>
    %85 = arith.subf %83, %84 : vector<1x8xf32>
    %c0_32 = arith.constant 0 : index
    %c0_33 = arith.constant 0 : index
    %86 = vector.load %arg9[%c0_32, %c0_33] : memref<1x8xf32, #tpu.memory_space<vmem>>, vector<1x8xf32>
    %cst_34 = arith.constant 9.99999974E-6 : f32
    %87 = vector.broadcast %cst_34 : f32 to vector<1x8xf32>
    %88 = arith.addf %85, %87 : vector<1x8xf32>
    %89 = math.rsqrt %88 : vector<1x8xf32>
    %90 = arith.mulf %86, %89 : vector<1x8xf32>
    %c0_35 = arith.constant 0 : index
    %c0_36 = arith.constant 0 : index
    %91 = vector.load %arg10[%c0_35, %c0_36] : memref<1x8xf32, #tpu.memory_space<vmem>>, vector<1x8xf32>
    %92 = arith.mulf %90, %78 : vector<1x8xf32>
    %93 = arith.subf %91, %92 : vector<1x8xf32>
    %94 = vector.broadcast %90 : vector<1x8xf32> to vector<16x8xf32>
    %95 = arith.mulf %74, %94 : vector<16x8xf32>
    %96 = vector.broadcast %93 : vector<1x8xf32> to vector<16x8xf32>
    %97 = arith.addf %95, %96 : vector<16x8xf32>
    %cst_37 = arith.constant 0.000000e+00 : f32
    %98 = vector.broadcast %cst_37 : f32 to vector<16x8xf32>
    %99 = arith.maximumf %97, %98 : vector<16x8xf32>
    %100 = tpu.concatenate %1, %62, %99 in 1 : vector<16x32xf32>, vector<16x16xf32>, vector<16x8xf32> -> vector<16x56xf32>
    %101 = arith.truncf %100 : vector<16x56xf32> to vector<16x56xbf16>
    %c0_38 = arith.constant 0 : index
    %c0_39 = arith.constant 0 : index
    %102 = vector.load %arg11[%c0_38, %c0_39] : memref<56x32xbf16, #tpu.memory_space<vmem>>, vector<56x32xbf16>
    %cst_40 = arith.constant dense<0.000000e+00> : vector<16x32xf32>
    %103 = tpu.matmul %101, %102, %cst_40 {dimension_numbers = #tpu.dot_dimension_numbers<[1], [0], [0], [1], [0, 0, 1, 1], [], []>} : vector<16x56xbf16>, vector<56x32xbf16>, vector<16x32xf32> -> vector<16x32xf32>
    %c0_41 = arith.constant 0 : index
    %c0_42 = arith.constant 0 : index
    %104 = vector.load %arg12[%c0_41, %c0_42] : memref<1x32xf32, #tpu.memory_space<vmem>>, vector<1x32xf32>
    %105 = vector.broadcast %104 : vector<1x32xf32> to vector<16x32xf32>
    %106 = arith.addf %103, %105 : vector<16x32xf32>
    %cst_43 = arith.constant 0.000000e+00 : f32
    %107 = vector.broadcast %cst_43 : f32 to vector<16x32xf32>
    %108 = arith.maximumf %106, %107 : vector<16x32xf32>
    %c0_44 = arith.constant 0 : index
    %c0_45 = arith.constant 0 : index
    %c0_46 = arith.constant 0 : index
    %109 = vector.load %arg13[%c0_44, %c0_45, %c0_46] : memref<1x16x32xf32, #tpu.memory_space<vmem>>, vector<1x16x32xf32>
    %110 = vector.shape_cast %109 : vector<1x16x32xf32> to vector<16x32xf32>
    %111 = vector.shape_cast %108 : vector<16x32xf32> to vector<1x16x32xf32>
    tpu.vector_store %arg13[%c0_44, %c0_45, %c0_46], %111 {strides = array<i32>} : memref<1x16x32xf32, #tpu.memory_space<vmem>>, vector<1x16x32xf32>,
    return
  }
  func.func @transform_0(%arg0: i32) -> (i32, i32, i32) {
    %c0_i32 = arith.constant 0 : i32
    %c0_i32_0 = arith.constant 0 : i32
    %c0_i32_1 = arith.constant 0 : i32
    return %arg0, %c0_i32, %c0_i32_0 : i32, i32, i32
  }
  func.func @transform_1(%arg0: i32) -> (i32, i32, i32) {
    %c0_i32 = arith.constant 0 : i32
    %c0_i32_0 = arith.constant 0 : i32
    %c0_i32_1 = arith.constant 0 : i32
    return %arg0, %c0_i32, %c0_i32_0 : i32, i32, i32
  }
  func.func @transform_2(%arg0: i32) -> (i32, i32) {
    %c0_i32 = arith.constant 0 : i32
    %c0_i32_0 = arith.constant 0 : i32
    %c0_i32_1 = arith.constant 0 : i32
    return %c0_i32, %c0_i32_0 : i32, i32
  }
  func.func @transform_3(%arg0: i32) -> (i32, i32) {
    %c0_i32 = arith.constant 0 : i32
    %c0_i32_0 = arith.constant 0 : i32
    %c0_i32_1 = arith.constant 0 : i32
    return %c0_i32, %c0_i32_0 : i32, i32
  }
  func.func @transform_4(%arg0: i32) -> (i32, i32) {
    %c0_i32 = arith.constant 0 : i32
    %c0_i32_0 = arith.constant 0 : i32
    %c0_i32_1 = arith.constant 0 : i32
    return %c0_i32, %c0_i32_0 : i32, i32
  }
  func.func @transform_5(%arg0: i32) -> (i32, i32) {
    %c0_i32 = arith.constant 0 : i32
    %c0_i32_0 = arith.constant 0 : i32
    %c0_i32_1 = arith.constant 0 : i32
    return %c0_i32, %c0_i32_0 : i32, i32
  }
  func.func @transform_6(%arg0: i32) -> (i32, i32) {
    %c0_i32 = arith.constant 0 : i32
    %c0_i32_0 = arith.constant 0 : i32
    %c0_i32_1 = arith.constant 0 : i32
    return %c0_i32, %c0_i32_0 : i32, i32
  }
  func.func @transform_7(%arg0: i32) -> (i32, i32) {
    %c0_i32 = arith.constant 0 : i32
    %c0_i32_0 = arith.constant 0 : i32
    %c0_i32_1 = arith.constant 0 : i32
    return %c0_i32, %c0_i32_0 : i32, i32
  }
  func.func @transform_8(%arg0: i32) -> (i32, i32) {
    %c0_i32 = arith.constant 0 : i32
    %c0_i32_0 = arith.constant 0 : i32
    %c0_i32_1 = arith.constant 0 : i32
    return %c0_i32, %c0_i32_0 : i32, i32
  }
  func.func @transform_9(%arg0: i32) -> (i32, i32) {
    %c0_i32 = arith.constant 0 : i32
    %c0_i32_0 = arith.constant 0 : i32
    %c0_i32_1 = arith.constant 0 : i32
    return %c0_i32, %c0_i32_0 : i32, i32
  }
  func.func @transform_10(%arg0: i32) -> (i32, i32) {
    %c0_i32 = arith.constant 0 : i32
    %c0_i32_0 = arith.constant 0 : i32
    %c0_i32_1 = arith.constant 0 : i32
    return %c0_i32, %c0_i32_0 : i32, i32
  }
  func.func @transform_11(%arg0: i32) -> (i32, i32) {
    %c0_i32 = arith.constant 0 : i32
    %c0_i32_0 = arith.constant 0 : i32
    %c0_i32_1 = arith.constant 0 : i32
    return %c0_i32, %c0_i32_0 : i32, i32
  }
  func.func @transform_12(%arg0: i32) -> (i32, i32, i32) {
    %c0_i32 = arith.constant 0 : i32
    %c0_i32_0 = arith.constant 0 : i32
    %c0_i32_1 = arith.constant 0 : i32
    return %arg0, %c0_i32, %c0_i32_0 : i32, i32, i32
  }
}

</mosaic_0001>

<bundles_post_ra>
// kernel: wireframe_gnn.1
= control target key start
LH: loop header
LB: loop body
LE: loop exit
PB: predicated region body
PF: predicated region fallthrough
CT: control target
= control target key end

     0   :  { %s1618_s0 = inlined_call_operand.vmem [shape: s32[4,2,40], index: 0, kind: input, shape index: {}]   ;;  %s1619_s1 = inlined_call_operand.vmem [shape: f32[4,16,32], index: 1, kind: input, shape index: {}]   ;;  %s1620_s2 = inlined_call_operand.vmem [shape: bf16[32,16], index: 2, kind: input, shape index: {}]   ;;  %s1621_s3 = inlined_call_operand.vmem [shape: f32[1,16], index: 3, kind: input, shape index: {}]   ;;  %s1622_s4 = inlined_call_operand.vmem [shape: f32[1,16], index: 4, kind: input, shape index: {}]   ;;  %s1623_s5 = inlined_call_operand.vmem [shape: f32[1,16], index: 5, kind: input, shape index: {}]   ;;  %s1624_s6 = inlined_call_operand.vmem [shape: bf16[16,8], index: 6, kind: input, shape index: {}]   ;;  %s1625_s7 = inlined_call_operand.vmem [shape: f32[1,8], index: 7, kind: input, shape index: {}]   ;;  %s1626_s8 = inlined_call_operand.vmem [shape: f32[1,8], index: 8, kind: input, shape index: {}]   ;;  %s1627_s9 = inlined_call_operand.vmem [shape: f32[1,8], index: 9, kind: input, shape index: {}]   ;;  %s1628_s10 = inlined_call_operand.vmem [shape: bf16[56,32], index: 10, kind: input, shape index: {}]   ;;  %s1629_s11 = inlined_call_operand.vmem [shape: f32[1,32], index: 11, kind: input, shape index: {}]   ;;  %s1630_s12 = inlined_call_operand.hbm [shape: f32[4,16,32], index: 12, kind: output, shape index: {}]  }
   0x1   :  { %1631 = sst [smem:[#allocation5_spill]] %s1618_s0 }
   0x2   :  { %1632 = sst [smem:[#allocation6_spill]] %s1619_s1 }
   0x3   :  { %17 = vsyncpa [#allocation3], 0 }
   0x4   :  { %19 = vsyncpa [#allocation3 + $0x1], 0  ;;  %s1394_s21 = smov 0   ;;  %s1396_s22 = smov 0  }
   0x5   :  { %s1398_s23 = smov 0   ;;  %s1400_s24 = smov 0  }
   0x6 LB: > { %s1415_s25 = sadd.s32 4294967295, %s1320_s24   ;;  %s1087_s26 = sadd.s32 4294967294, %s1320_s24   ;;  %s1320_s24 = sphi %s1400_s24, %s1640_s24   ;;  %s1316_s23 = sphi %s1398_s23, %s1639_s23   ;;  %s1312_s22 = sphi %s1396_s22, %s1638_s22   ;;  %s1308_s21 = sphi %s1394_s21, %s1637_s21  }
   0x7   : > { %s1419_s27 = sadd.s32 1, %s1320_s24   ;;  %s294_s28 = sadd.s32 1, %s1316_s23 }
   0x8   : > { %s291_s29 = ssub.s32 %s1320_s24, %s1419_s27  ;;  %p304_p0 = scmp.ne.s32.totalorder %s1316_s23, %s1312_s22 }
   0x9   : > { %p292_p1 = scmp.eq.s32.totalorder %s291_s29, 0  ;;  %p305_p2 = scmp.eq.s32.totalorder %s1415_s25, 3 }
   0xa   : > { %p310_p3 = scmp.ne.s32.totalorder %s1312_s22, %s1308_s21  ;;  %p311_p4 = scmp.eq.s32.totalorder %s1087_s26, 3 }
   0xb   : > { %s1430_s30 = scalar_select %p292_p1, %s1316_s23, %s294_s28  }
   0xc   : > { %p1432_p5 = por %p305_p2, %p304_p0  ;;  %p1436_p6 = por %p311_p4, %p310_p3 }
   0xd   : > { %p1090_p7 = scmp.ge.s32.totalorder %s1320_s24, 1  ;;  %p374_p8 = scmp.lt.s32.totalorder %s1320_s24, 5 }
   0xf   : > { %p375_p9 = pnand %p1090_p7, %p374_p8 }
  0x10   : > { %p420_p10 = scmp.lt.s32.totalorder (!%p375_p9), %s1415_s25, 3  ;;  %s1635_s0 = sld [smem:[#allocation5_spill]] (!%p375_p9) }
  0x11   : > { %378 = sbr.rel (%p375_p9) target bundleno = 1444 (0x5a4), region = 68  ;;  %s1636_s1 = sld [smem:[#allocation6_spill]] (!%p375_p9) }
  0x12   : > { %s417_s16 = sand.u32 (!%p375_p9), 1, %s1312_s22   ;;  %s1126_s28 = sshll.u32 (!%p375_p9), %s1415_s25, 8 }
  0x13   : > { %s1575_s18 = scalar_lea.hbm (!%p375_p9), %s1630_s12, %s1126_s28 }
  0x16   : > { %v433_v0 = vlaneseq  ;;  %v1245_v1 = vld [vmem:[%s1620_s2 + $0x8] sm:$0xff]   ;;  %v1322_v2 = vmov 0.0   ;;  %s421_s17 = scalar_select %p420_p10, %s1415_s25, 3  ;;  %v1246_v4 = vld [vmem:[%s1620_s2] sm:$0xff]   ;;  %vm1323_vm0 = vmmov 0   ;;  %vm579_vm1 = vcmask 261120  }
  0x17   : > { %1152 = vmatprep.subr.bf16.mxu1 %v1322_v2  ;;  %1156 = vmatprep.mubr.msk.bf16.mxu1 %vm1323_vm0, %v1322_v2  ;;  %vm464_vm3 = vcmask 326656   ;;  %vm552_vm9 = vcmask 130048   ;;  %v1247_v39 = vld [vmem:[%s1624_s6] sm:$0xff]   ;;  %vm950_vm10 = vcmask 1043456   ;;  %vm839_vm11 = vcmask 64512  }
  0x18   : > { %v434_v3 = vshrl.u32 %v433_v0, 7  ;;  %1153 = vmatpush3.bf16.msra.mxu1 %v1245_v1  ;;  %v457_v5 = vand.u32 127, %v433_v0  ;;  %s1092_s20 = sshll.u32 %s421_s17, 1  ;;  %s1125_s26 = sshll.u32 %s421_s17, 4  ;;  %v1109_v41 = vld [vmem:[%s1621_s3] ss:$0 sm:$0xff] }
  0x19   : > { %1154 = vmatprep.subr.bf16.mxu1 %v1322_v2  ;;  %s423_s15 = scalar_lea.vmem %s1635_s0, %s1092_s20  ;;  %s428_s19 = scalar_lea.vmem %s1636_s1, %s1125_s26  ;;  %vm907_vm12 = vcmask 392192   ;;  %vm946_vm13 = vcmask 457728  }
  0x1a   : > { %v435_v6 = vadd.s32 8, %v434_v3  ;;  %v1454_v7 = vsub.s32 0, %v434_v3  ;;  %v448_v8 = vsub.s32 1, %v434_v3  ;;  %v432_v9 = vld [vmem:[%s423_s15] sm:$0x3]  ;;  %v1464_v11 = vld [vmem:[%s428_s19 + $0x8] sm:$0xff]  ;;  %vm458_vm8 = vcmp.eq.s32.totalorder %v434_v3, %v457_v5 }
  0x1b   : > { %v1462_v10 = vld [vmem:[%s428_s19] sm:$0xff]  ;;  %v1099_v21 = vsel %vm458_vm8, 1.0, %v1322_v2  ;;  %s1324_s19 = smov 32   ;;  %s1325_s15 = smov 48  }
  0x1c   : > { %1155 = vmatpush3.bf16.msra.mxu1 %v1246_v4  ;;  %vm459_vm2 = vcmp.eq.s32.totalorder %v435_v6, %v457_v5  ;;  %v439_v12 = vrot.slane %v432_v9, %v1454_v7  ;;  %v449_v13 = vrot.slane %v432_v9, %v448_v8  ;;  %v562_v14 = vpack.c.bf16 %v1464_v11, %v1462_v10  ;;  %s1091_s17 = sshll.u32 %s417_s16, 4 }
  0x1d   : > { %1178 = vmatprep.subr.bf16.mxu1 %v1322_v2  ;;  %v1100_v19 = vsel %vm459_vm2, 1.0, %v1322_v2  ;;  %s419_s20 = scalar_lea.vmem [#allocation2], %s1091_s17  ;;  %s1326_s17 = smov [#allocation2]  }
  0x1e   : > { %vm441_vm4 = vcmp.eq.s32.totalorder %v435_v6, %v439_v12  ;;  %vm440_vm5 = vcmp.eq.s32.totalorder %v434_v3, %v439_v12  ;;  %vm450_vm6 = vcmp.eq.s32.totalorder %v434_v3, %v449_v13  ;;  %vm451_vm7 = vcmp.eq.s32.totalorder %v435_v6, %v449_v13  ;;  %s1013_s26 = sshll.u32 %s419_s20, 4  ;;  %s1264_s0 = sshll.u32 %s1326_s17, 4  ;;  %s1570_s26 = int_to_ptr.vmem [resolvable:$true] %s1013_s26  ;;  %s1265_s0 = int_to_ptr.vmem [resolvable:$false] %s1264_s0 }
  0x1f   : > { %1157 = vmatmul.mubr.msk.bf16.vlgmr.msra.gmra.mxu1 %vm579_vm1, %v562_v14  ;;  %v1096_v15 = vsel %vm441_vm4, 1.0, %v1322_v2  ;;  %v1095_v16 = vsel %vm440_vm5, 1.0, %v1322_v2  ;;  %v1097_v17 = vsel %vm450_vm6, 1.0, %v1322_v2  ;;  %v1098_v18 = vsel %vm451_vm7, 1.0, %v1322_v2  ;;  %v706_v14 = vld [vmem:[%s1622_s4] sm:$0x1]  ;;  %p1267_p0 = scmp.lt.s32.totalorder %s1570_s26, %s1265_s0 }
  0x20   : > { %1186 = vmatprep.mubr.msk.bf16.mxu1 %vm1323_vm0, %v1322_v2  ;;  %1145 = vmatprep.subr.msk.mxu0 %vm464_vm3, %v1096_v15  ;;  %s1260_s25 = scalar_lea.vmem %s1570_s26, 256  ;;  %s1266_s1 = scalar_lea.vmem %s1265_s0, 512 }
  0x21   : > { %1149 = vmatprep.mubr.msk.f32.mxu0 %vm464_vm3, %v1097_v17  ;;  %1146 = vmatpush3.xpose.msk.msra.mxu0 %vm464_vm3, %v1096_v15  ;;  %v710_v17 = vld [vmem:[%s1623_s5] sm:$0x1]  ;;  %p1261_p11 = scmp.ne.s32.totalorder %s1570_s26, %s1260_s25  ;;  %p1268_p1 = scmp.lt.s32.totalorder %s1266_s1, %s1260_s25 }
  0x22   : > { %1147 = vmatprep.subr.msk.mxu0 %vm464_vm3, %v1095_v16 }
  0x23   : > { %p1262_p12 = pnand %p1261_p11, %p1432_p5  ;;  %p1269_p2 = por %p1268_p1, %p1267_p0 }
  0x25   : > { %1148 = vmatpush3.xpose.msk.msra.mxu0 %vm464_vm3, %v1095_v16  ;;  %p1263_p13 = pneg %p1262_p12 }
  0x26   : > { %1160 = vmatprep.subr.bf16.mxu0 %v1322_v2 }
  0x27   : > { %p1270_p3 = pnand %p1269_p2, %p1263_p13 }
  0x28   : > { %1150 = vmatmul.mubr.msk.f32.vlgmr.msra.gmra.mxu0 %vm464_vm3, %v1098_v18 }
  0x29   : > { %1162 = vmatprep.mubr.msk.bf16.mxu0 %vm1323_vm0, %v1322_v2 }
  0xdf   : > { %v617_v28 = vpop.f32.mrf.mxu1 }
  0xe1   : > { %v1158_v29 = vpop.f32.mrf.mxu1 }
  0xe3   : > { %v620_v30 = vpop.f32.mrf.mxu1 }
  0xe5   : > { %v1159_v31 = vpop.f32.mrf.mxu1 }
  0xe8   : > { %v1151_v20 = vpop.f32.mrf.mxu0 }
  0xe9   : > { %v549_v23 = vadd.f32 %v1151_v20, %v1100_v19 }
  0xea   : > { %v543_v22 = vpop.f32.mrf.mxu0 }
  0xeb   : > { %v544_v24 = vadd.f32 %v1099_v21, %v543_v22  ;;  %v556_v27 = vsel %vm552_vm9, %v549_v23, 0.0 }
  0xed   : > { %v1489_v25 = vpack.c.bf16 %v549_v23, %v544_v24  ;;  %v553_v26 = vsel %vm552_vm9, %v544_v24, 0.0 }
  0xee   : > { %554 = vadd.xlane.f32.xlu0 %v553_v26 }
  0xf2   : > { %557 = vadd.xlane.f32.xlu0 %v556_v27 }
 0x177   : > { %v555_v32 = vpop.xlane.xlu0 %554 }
 0x178   : > { %1252 = vrsqrt.f32 %v555_v32 }
 0x17b   : > { %v558_v33 = vpop.xlane.xlu0 %557 }
 0x17c   : > { %1254 = vrsqrt.f32 %v558_v33 }
 0x185   : > { %v1493_v34 = vpop.eup %1252 }
 0x186   : > { %v624_v36 = vmul.f32 %v1493_v34, %v617_v28 }
 0x189   : > { %v1495_v35 = vpop.eup %1254 }
 0x18a   : > { %v625_v37 = vmul.f32 %v1495_v35, %v620_v30 }
 0x18c   : > { %v626_v38 = vpack.c.bf16 %v625_v37, %v624_v36 }
 0x18e   : > { %1161 = vmatpush3.bf16.msra.mxu0 %v626_v38 }
 0x18f   : > { %1166 = vmatprep.subr.bf16.mxu0 %v1322_v2 }
 0x191   : > { %1163 = vmatmul.mubr.msk.bf16.vlgmr.msra.gmra.mxu0 %vm552_vm9, %v1489_v25 }
 0x192   : > { %1168 = vmatprep.mubr.msk.bf16.mxu0 %vm1323_vm0, %v1322_v2  ;;  %1167 = vmatpush3.bf16.msra.mxu0 %v1247_v39 }
 0x193   : > { %1172 = vmatprep.subr.bf16.mxu0 %v1322_v2 }
 0x251   : > { %v664_v40 = vpop.f32.mrf.mxu0 }
 0x252   : > { %v671_v42 = vmul.f32 %v1493_v34, %v664_v40  ;;  %v1248_v40 = vld [vmem:[%s1628_s10 + $0x18] ss:$0 sps:$4 sm:$0xff]  }
 0x253   : > { %v1164_v43 = vpop.f32.mrf.mxu0 }
 0x254   : > { %v680_v44 = vadd.f32 %v1109_v41, %v671_v42  ;;  %v1249_v42 = vld [vmem:[%s1628_s10 + $0x10] sm:$0xff]   ;;  %v1250_v43 = vld [vmem:[%s1628_s10 + $0x8] sm:$0xff]  }
 0x255   : > { %v667_v45 = vpop.f32.mrf.mxu0 }
 0x256   : > { %v672_v46 = vmul.f32 %v1495_v35, %v667_v45  ;;  %v692_v48 = vmul.f32 %v680_v44, %v680_v44  ;;  %v682_v50 = vsel %vm552_vm9, %v680_v44, 0.0 }
 0x257   : > { %v1165_v47 = vpop.f32.mrf.mxu0 }
 0x258   : > { %v681_v49 = vadd.f32 %v1109_v41, %v672_v46  ;;  %v694_v54 = vsel %vm552_vm9, %v692_v48, 0.0  ;;  %v952_v41 = vsel %vm950_vm10, %v1248_v40, 0 }
 0x259   : > { %1179 = vmatpush3.bf16.msra.mxu1 %v952_v41 }
 0x25a   : > { %v683_v51 = vsel %vm552_vm9, %v681_v49, 0.0  ;;  %v693_v52 = vmul.f32 %v681_v49, %v681_v49  ;;  %1180 = vmatprep.subr.bf16.mxu1 %v1322_v2 }
 0x25b   : > { %v684_v53 = vadd.f32 %v683_v51, %v682_v50 }
 0x25c   : > { %v695_v55 = vsel %vm552_vm9, %v693_v52, 0.0 }
 0x25d   : > { %v685_v56 = vrot.slane %v684_v53, 4  ;;  %v696_v57 = vadd.f32 %v695_v55, %v694_v54  ;;  %1181 = vmatpush3.bf16.msra.mxu1 %v1249_v42 }
 0x25e   : > { %1182 = vmatprep.subr.bf16.mxu1 %v1322_v2 }
 0x25f   : > { %v686_v58 = vadd.f32 %v685_v56, %v684_v53  ;;  %v697_v59 = vrot.slane %v696_v57, 4 }
 0x261   : > { %v687_v60 = vrot.slane %v686_v58, 2  ;;  %v698_v61 = vadd.f32 %v697_v59, %v696_v57  ;;  %1183 = vmatpush3.bf16.msra.mxu1 %v1250_v43  ;;  %v1114_v43 = vld [vmem:[%s1629_s11] ss:$0 sm:$0xff] }
 0x262   : > { %1184 = vmatprep.subr.bf16.mxu1 %v1322_v2 }
 0x263   : > { %v688_v62 = vadd.f32 %v687_v60, %v686_v58  ;;  %v699_v63 = vrot.slane %v698_v61, 2 }
 0x265   : > { %v689_v0 = vrot.slane %v688_v62, 1  ;;  %v700_v1 = vadd.f32 %v699_v63, %v698_v61 }
 0x267   : > { %v701_v3 = vrot.slane %v700_v1, 1  ;;  %v690_v4 = vadd.f32 %v689_v0, %v688_v62 }
 0x269   : > { %v702_v5 = vadd.f32 %v701_v3, %v700_v1  ;;  %v691_v6 = vmul.f32 0.0625, %v690_v4 }
 0x26b   : > { %v703_v8 = vmul.f32 0.0625, %v702_v5  ;;  %v704_v9 = vmul.f32 %v691_v6, %v691_v6 }
 0x26d   : > { %v705_v12 = vsub.f32 %v703_v8, %v704_v9 }
 0x26f   : > { %v707_v13 = vadd.f32 1e-05, %v705_v12 }
 0x271   : > { %1256 = vrsqrt.f32 %v707_v13 }
 0x27e   : > { %v1257_v15 = vpop.eup %1256 }
 0x27f   : > { %v709_v16 = vmul.f32 %v1257_v15, %v706_v14  ;;  %v864_v14 = vld [vmem:[%s1626_s8] sm:$0x1] }
 0x281   : > { %v711_v18 = vmul.f32 %v709_v16, %v691_v6  ;;  %v717_v19 = vrot.slane %v709_v16, %v1454_v7 }
 0x283   : > { %v712_v20 = vsub.f32 %v710_v17, %v711_v18  ;;  %v719_v21 = vmul.f32 %v717_v19, %v680_v44  ;;  %v720_v22 = vmul.f32 %v717_v19, %v681_v49  ;;  %v1113_v44 = vld [vmem:[%s1625_s7] ss:$0 sm:$0xff] }
 0x284   : > { %v868_v17 = vld [vmem:[%s1627_s9] sm:$0x1] }
 0x285   : > { %v725_v23 = vrot.slane %v712_v20, %v1454_v7  ;;  %v1251_v18 = vld [vmem:[%s1628_s10] sm:$0xff]  }
 0x286   : > { %1185 = vmatpush3.bf16.msra.mxu1 %v1251_v18 }
 0x287   : > { %v727_v24 = vadd.f32 %v725_v23, %v719_v21  ;;  %v728_v26 = vadd.f32 %v725_v23, %v720_v22 }
 0x289   : > { %v729_v27 = vmax.f32 %v727_v24, 0.0  ;;  %v730_v28 = vmax.f32 %v728_v26, 0.0 }
 0x28b   : > { %v1235_v29 = vpack.i.bf16 %v730_v28, %v729_v27  ;;  %v731_v30 = vpack.c.bf16 %v730_v28, %v729_v27 }
 0x28d   : > { %1236 = vrot.lane.b32.xlu1 %v1235_v29, %s1324_s19  ;;  %1169 = vmatmul.mubr.msk.bf16.vlgmr.msra.gmra.mxu0 %vm552_vm9, %v731_v30  ;;  %s1578_s19 = scalar_lea.sflag [#allocation3], %s417_s16 }
 0x28e   : > { %1174 = vmatprep.mubr.msk.bf16.mxu0 %vm1323_vm0, %v1322_v2 }
 0x34d   : > { %v777_v31 = vpop.f32.mrf.mxu0 }
 0x34e   : > { %v784_v36 = vmul.f32 %v1493_v34, %v777_v31  ;;  %v1237_v31 = vpop.permute.xlu1 %1236 }
 0x34f   : > { %v1170_v32 = vpop.f32.mrf.mxu0 }
 0x350   : > { %v1239_v32 = vunpack.i.h.bf16 %v1237_v31 }
 0x351   : > { %v780_v33 = vpop.f32.mrf.mxu0 }
 0x352   : > { %v785_v37 = vmul.f32 %v1495_v35, %v780_v33  ;;  %v1238_v33 = vunpack.i.l.bf16 %v1237_v31 }
 0x353   : > { %v1171_v38 = vpop.f32.mrf.mxu0 }
 0x354   : > { %v786_v39 = vpack.c.bf16 %v785_v37, %v784_v36 }
 0x356   : > { %1173 = vmatpush3.bf16.msra.mxu0 %v786_v39  ;;  %v906_v39 = vsel %vm579_vm1, %v1464_v11, %v1239_v32 }
 0x359   : > { %1175 = vmatmul.mubr.msk.bf16.vlgmr.msra.gmra.mxu0 %vm552_vm9, %v1489_v25 }
 0x419   : > { %v821_v25 = vpop.f32.mrf.mxu0 }
 0x41a   : > { %v828_v45 = vmul.f32 %v1493_v34, %v821_v25 }
 0x41b   : > { %v1176_v46 = vpop.f32.mrf.mxu0 }
 0x41c   : > { %v837_v47 = vadd.f32 %v1113_v44, %v828_v45 }
 0x41d   : > { %v824_v48 = vpop.f32.mrf.mxu0 }
 0x41e   : > { %v829_v49 = vmul.f32 %v1495_v35, %v824_v48  ;;  %v850_v51 = vmul.f32 %v837_v47, %v837_v47  ;;  %v840_v53 = vsel %vm839_vm11, %v837_v47, 0.0 }
 0x41f   : > { %v1177_v50 = vpop.f32.mrf.mxu0 }
 0x420   : > { %v838_v52 = vadd.f32 %v1113_v44, %v829_v49  ;;  %v852_v56 = vsel %vm839_vm11, %v850_v51, 0.0 }
 0x422   : > { %v841_v54 = vsel %vm839_vm11, %v838_v52, 0.0  ;;  %v851_v55 = vmul.f32 %v838_v52, %v838_v52 }
 0x423   : > { %v842_v2 = vadd.f32 %v841_v54, %v840_v53 }
 0x424   : > { %v853_v57 = vsel %vm839_vm11, %v851_v55, 0.0 }
 0x425   : > { %v843_v58 = vrot.slane %v842_v2, 4  ;;  %v854_v59 = vadd.f32 %v853_v57, %v852_v56 }
 0x427   : > { %v844_v60 = vadd.f32 %v843_v58, %v842_v2  ;;  %v855_v61 = vrot.slane %v854_v59, 4 }
 0x429   : > { %v845_v34 = vrot.slane %v844_v60, 2  ;;  %v856_v62 = vadd.f32 %v855_v61, %v854_v59 }
 0x42b   : > { %v846_v63 = vadd.f32 %v845_v34, %v844_v60  ;;  %v857_v0 = vrot.slane %v856_v62, 2 }
 0x42d   : > { %v847_v1 = vrot.slane %v846_v63, 1  ;;  %v858_v35 = vadd.f32 %v857_v0, %v856_v62 }
 0x42f   : > { %v848_v3 = vadd.f32 %v847_v1, %v846_v63  ;;  %v859_v4 = vrot.slane %v858_v35, 1 }
 0x431   : > { %v849_v5 = vmul.f32 0.0625, %v848_v3  ;;  %v860_v6 = vadd.f32 %v859_v4, %v858_v35 }
 0x433   : > { %v861_v8 = vmul.f32 0.0625, %v860_v6  ;;  %v862_v9 = vmul.f32 %v849_v5, %v849_v5 }
 0x435   : > { %v863_v12 = vsub.f32 %v861_v8, %v862_v9 }
 0x437   : > { %v865_v13 = vadd.f32 1e-05, %v863_v12 }
 0x439   : > { %1258 = vrsqrt.f32 %v865_v13 }
 0x446   : > { %v1259_v15 = vpop.eup %1258 }
 0x447   : > { %v867_v16 = vmul.f32 %v1259_v15, %v864_v14 }
 0x449   : > { %v875_v19 = vrot.slane %v867_v16, %v1454_v7  ;;  %v869_v20 = vmul.f32 %v867_v16, %v849_v5 }
 0x44b   : > { %v870_v21 = vsub.f32 %v868_v17, %v869_v20  ;;  %v878_v22 = vmul.f32 %v875_v19, %v838_v52  ;;  %v877_v23 = vmul.f32 %v875_v19, %v837_v47 }
 0x44d   : > { %v883_v24 = vrot.slane %v870_v21, %v1454_v7  ;;  %v905_v7 = vsel %vm579_vm1, %v1462_v10, %v1238_v33 }
 0x44f   : > { %v885_v26 = vadd.f32 %v883_v24, %v877_v23  ;;  %v886_v27 = vadd.f32 %v883_v24, %v878_v22 }
 0x451   : > { %v887_v28 = vmax.f32 %v885_v26, 0.0  ;;  %v888_v29 = vmax.f32 %v886_v27, 0.0 }
 0x453   : > { %v1240_v30 = vpack.i.bf16 %v888_v29, %v887_v28 }
 0x455   : > { %1241 = vrot.lane.b32.xlu1 %v1240_v30, %s1325_s15 }
 0x4c7   : > { %v1242_v36 = vpop.permute.xlu1 %1241 }
 0x4c8   : > { %v1244_v37 = vunpack.i.h.bf16 %v1242_v36  ;;  %v1243_v38 = vunpack.i.l.bf16 %v1242_v36 }
 0x4ca   : > { %v909_v40 = vsel %vm907_vm12, %v906_v39, %v1244_v37  ;;  %v908_v41 = vsel %vm907_vm12, %v905_v7, %v1243_v38 }
 0x4cb   : > { %v910_v42 = vpack.c.bf16 %v909_v40, %v908_v41 }
 0x4cd   : > { %1187 = vmatmul.mubr.msk.bf16.vlgmr.msra.gmra.mxu1 %vm946_vm13, %v910_v42 }
 0x58d   : > { %v988_v25 = vpop.f32.mrf.mxu1 }
 0x58e   : > { %v989_v44 = vadd.f32 %v1114_v43, %v988_v25 }
 0x58f   : > { %v1188_v45 = vpop.f32.mrf.mxu1 }
 0x590   : > { %v995_v11 = vmax.f32 %v989_v44, 0.0 }
 0x591   : > { %v991_v10 = vpop.f32.mrf.mxu1 }
 0x592   : > { %997 = vst.msk [vmem:[%s419_s20] sm:$0xff] %vm579_vm1, %v995_v11  ;;  %v992_v46 = vadd.f32 %v1114_v43, %v991_v10 }
 0x593   : > { %v1189_v47 = vpop.f32.mrf.mxu1 }
 0x594   : > { %v996_v48 = vmax.f32 %v992_v46, 0.0 }
 0x596   : > { %998 = vst.msk [vmem:[%s419_s20 + $0x8] sm:$0xff] %vm579_vm1, %v996_v48 }
 0x597   : > { %1273 = shalt.err (!%p1270_p3)
}
 0x598   : > { %s1274_s16 = scalar_lea.hbm %s1575_s18, 256  ;;  %s1278_s29 = scalar_lea.hbm %s1630_s12, 1024 }
 0x599   : > { %p1275_p4 = scmp.ne.s32.totalorder %s1575_s18, %s1274_s16  ;;  %p1279_p9 = scmp.lt.s32.totalorder %s1575_s18, %s1630_s12 }
 0x59a   : > { %p1280_p10 = scmp.lt.s32.totalorder %s1278_s29, %s1274_s16 }
 0x59b   : > { %p1276_p7 = pnand %p1275_p4, %p1432_p5 }
 0x59c   : > { %p1281_p11 = por %p1280_p10, %p1279_p9 }
 0x59d   : > { %p1277_p8 = pneg %p1276_p7 }
 0x59f   : > { %p1282_p12 = pnand %p1281_p11, %p1277_p8 }
 0x5a1   : > { %1285 = shalt.err (!%p1282_p12)
}
 0x5a2   : > { %s1327_s0 = smov 128   ;;  %s1328_s1 = smov 8  }
 0x5a3   : > { %1190 = dma.vmem_to_hbm [thread:$0]  (%p1432_p5), %s1570_s26, 256, %s1575_s18, %s1578_s19, %s1327_s0, %s1327_s0, %s1328_s1  }
 0x5a4 PF: > { %p1196_p13 = scmp.ge.s32.totalorder %s1320_s24, 2  ;;  %s1028_s25 = sand.u32 1, %s1308_s21  }
 0x5a5   : > { %s1029_s16 = scalar_lea.sflag [#allocation3], %s1028_s25 }
 0x5a6   : > { %p1193_p0 = pnand %p1196_p13, %p1436_p6 }
 0x5a8   : > { %p1194_p1 = pneg %p1193_p0 }
 0x5aa   : > { %1303 = dma.done.wait (%p1194_p1), %s1029_s16, 256  }
 0x5ab   : > { %1305 = vsyncadd (%p1194_p1), %s1029_s16, 4294967040  ;;  %p22_p2 = scmp.ge.s32.totalorder %s1419_s27, 6   ;;  %s1637_s21 = smov %s1312_s22 }
 0x5ac   : > { %s1638_s22 = smov %s1316_s23  ;;  %s1639_s23 = smov %s1430_s30 }
 0x5ad   : > { %s1640_s24 = smov %s1419_s27  ;;  %24 = sbr.rel (!%p22_p2) target bundleno = 6 (0x6), region = 106 }
 0x5b2   :  { %1034 = vsyncpa [#allocation3], 1 }
 0x5b3   :  { %1036 = vsyncpa [#allocation3 + $0x1], 1 }

</bundles_post_ra>
